<compile_context>
chip_gen: v5e
topology: v5e:2x2
jax: 0.10.0
libtpu: 0.0.40
codegen_flags: <defaults>
</compile_context>

<pallas_src>
import functools

import jax
import jax.numpy as jnp
import numpy as np
from jax.experimental import pallas as pl
from jax.experimental.pallas import tpu as pltpu


def _make_encoder_kernel(n_layer: int, eps: float = 1e-5):
    """Builds a kernel: (attr, pe, valid, *mlp_params, out) -> None."""

    def kernel(*refs):
        attr_ref, pe_ref, valid_ref = refs[0], refs[1], refs[2]
        out_ref = refs[-1]
        params = refs[3:-1]

        # Inputs may be streamed as bf16; all math is f32.
        x = attr_ref[...].astype(jnp.float32)           # [tile, attr_dim]
        idx = 0
        for li in range(n_layer):
            w = params[idx][...]                         # [in, out]
            b = params[idx + 1][...]                     # [1, out]
            idx += 2
            x = jnp.dot(x, w, preferred_element_type=jnp.float32) + b
            if li < n_layer - 1:
                # LayerNorm (use_layernorm=True) + ReLU; Dropout is identity in eval.
                g = params[idx][...]                     # [1, out]
                beta = params[idx + 1][...]              # [1, out]
                idx += 2
                # One-pass LN: var = E[x^2] - mean^2 (single extra elementwise mul,
                # one fewer cross-lane reduce than the two-pass form).
                mu = jnp.mean(x, axis=-1, keepdims=True)
                ex2 = jnp.mean(x * x, axis=-1, keepdims=True)
                var = jnp.maximum(ex2 - mu * mu, 0.0)
                x = (x - mu) * jax.lax.rsqrt(var + eps) * g + beta
                x = jnp.maximum(x, 0.0)

        x = x + pe_ref[...].astype(jnp.float32)          # pe_mode == "add"
        # masked_fill(~valid, 0); valid block is [tile, 1], broadcast along lanes.
        out_ref[...] = jnp.where(valid_ref[...] > 0.0, x, 0.0)

    return kernel


def init_params(key, attr_dim: int, hidden_dim: int, n_layer: int):
    """Deterministic MLP parameters. Returns a flat list matching kernel order."""
    dims = [attr_dim] + [hidden_dim] * n_layer
    params = []
    for li in range(n_layer):
        key, kw, kb = jax.random.split(key, 3)
        fan_in = dims[li]
        bound = 1.0 / np.sqrt(fan_in)
        w = jax.random.uniform(kw, (dims[li], dims[li + 1]), jnp.float32, -bound, bound)
        b = jax.random.uniform(kb, (1, dims[li + 1]), jnp.float32, -bound, bound)
        params += [w, b]
        if li < n_layer - 1:
            # LayerNorm affine params (gamma=1, beta=0 at init, like nn.LayerNorm)
            params += [jnp.ones((1, dims[li + 1]), jnp.float32),
                       jnp.zeros((1, dims[li + 1]), jnp.float32)]
    return params


def _round_up(x: int, m: int) -> int:
    return ((x + m - 1) // m) * m


@functools.partial(jax.jit, static_argnames=("n_layer", "tile_n", "stream_dtype"))
def input_pe_encoder(valid, attr, pe, params, *, n_layer: int, tile_n: int = 1024,
                     stream_dtype=jnp.float32):
    """valid: [...] bool, attr: [..., attr_dim], pe: [..., hidden_dim] -> [..., hidden_dim] f32.

    stream_dtype: dtype used to stream attr/pe through HBM (f32 exact; bf16 halves
    input traffic and is recommended on v6e/v7x).  Compute is always f32.
    """
    lead = attr.shape[:-1]
    attr_dim = attr.shape[-1]
    hidden_dim = pe.shape[-1]
    n = int(np.prod(lead)) if lead else 1

    attr2 = attr.reshape(n, attr_dim).astype(stream_dtype)
    pe2 = pe.reshape(n, hidden_dim).astype(stream_dtype)
    valid2 = valid.reshape(n, 1).astype(jnp.float32)

    # Big row tiles; no host-side padding.  The last (partial) block reads undefined
    # rows, but every row is computed independently and OOB writes are discarded.
    tile = max(8, min(tile_n, _round_up(n, 8)))
    grid = ((n + tile - 1) // tile,)

    row_spec = lambda d: pl.BlockSpec((tile, d), lambda i: (i, 0))
    full_spec = lambda p: pl.BlockSpec(p.shape, lambda i: (0,) * p.ndim)

    in_specs = [row_spec(attr_dim), row_spec(hidden_dim), row_spec(1)]
    in_specs += [full_spec(p) for p in params]          # weights stay VMEM-resident

    out = pl.pallas_call(
        _make_encoder_kernel(n_layer),
        out_shape=jax.ShapeDtypeStruct((n, hidden_dim), jnp.float32),
        grid_spec=pltpu.PrefetchScalarGridSpec(
            num_scalar_prefetch=0,
            grid=grid,
            in_specs=in_specs,
            out_specs=row_spec(hidden_dim),
        ),
        compiler_params=pltpu.CompilerParams(dimension_semantics=("parallel",)),
    )(attr2, pe2, valid2, *params)

    return out.reshape(*lead, hidden_dim)


def _reference(valid, attr, pe, params, n_layer, eps=1e-5):
    x = attr.astype(jnp.float32)
    idx = 0
    for li in range(n_layer):
        w, b = params[idx], params[idx + 1]
        idx += 2
        x = x @ w + b
        if li < n_layer - 1:
            g, beta = params[idx], params[idx + 1]
            idx += 2
            mu = jnp.mean(x, axis=-1, keepdims=True)
            var = jnp.mean((x - mu) ** 2, axis=-1, keepdims=True)
            x = (x - mu) * jax.lax.rsqrt(var + eps) * g + beta
            x = jnp.maximum(x, 0.0)
    x = x + pe
    return jnp.where(valid[..., None], x, 0.0)


if __name__ == "__main__":
    # Module config (pe_mode="add" requires pe_dim == hidden_dim).
    hidden_dim = 32
    attr_dim = 16
    n_layer = 2

    key = jax.random.PRNGKey(0)
    k_attr, k_pe, k_valid, k_params = jax.random.split(key, 4)
    params = init_params(k_params, attr_dim, hidden_dim, n_layer)

    # --- small shape from the spec: batch=2, seq=8 ---------------------------------
    batch, seq = 2, 8
    attr = jax.random.normal(k_attr, (batch, seq, attr_dim), jnp.float32)
    pe = jax.random.normal(k_pe, (batch, seq, hidden_dim), jnp.float32)
    valid = jax.random.bernoulli(k_valid, 0.7, (batch, seq))

    ref = _reference(valid, attr, pe, params, n_layer)

    # f32 streaming (exact path; the right choice on v5e).
    out = jax.block_until_ready(input_pe_encoder(valid, attr, pe, params, n_layer=n_layer))
    np.testing.assert_allclose(np.asarray(out), np.asarray(ref), rtol=1e-4, atol=1e-4)
    assert out.shape == (batch, seq, hidden_dim) and out.dtype == jnp.float32

    # bf16 input streaming (halves input HBM traffic; pays on v6e/v7x). Compute stays f32.
    out_bf16 = jax.block_until_ready(
        input_pe_encoder(valid, attr, pe, params, n_layer=n_layer, stream_dtype=jnp.bfloat16))
    np.testing.assert_allclose(np.asarray(out_bf16), np.asarray(ref), rtol=5e-2, atol=1e-1)

    # --- coverage: multi-tile grid + partial (unpadded) last block -------------------
    b2, s2 = 4, 300                                   # n = 1200 -> grid=(2,) at tile_n=1024
    attr2 = jax.random.normal(k_attr, (b2, s2, attr_dim), jnp.float32)
    pe2 = jax.random.normal(k_pe, (b2, s2, hidden_dim), jnp.float32)
    valid2 = jax.random.bernoulli(k_valid, 0.7, (b2, s2))
    out2 = jax.block_until_ready(input_pe_encoder(valid2, attr2, pe2, params, n_layer=n_layer))
    ref2 = _reference(valid2, attr2, pe2, params, n_layer)
    np.testing.assert_allclose(np.asarray(out2), np.asarray(ref2), rtol=1e-4, atol=1e-4)

    print("KERNEL_OK")
</pallas_src>

<mosaic_0001>
module attributes {stable_mosaic.version = 11 : i64} {
  func.func @kernel(%arg0: i32, %arg1: memref<16x16xf32, #tpu.memory_space<vmem>>, %arg2: memref<16x32xf32, #tpu.memory_space<vmem>>, %arg3: memref<16x1xf32, #tpu.memory_space<vmem>>, %arg4: memref<16x32xf32, #tpu.memory_space<vmem>>, %arg5: memref<1x32xf32, #tpu.memory_space<vmem>>, %arg6: memref<1x32xf32, #tpu.memory_space<vmem>>, %arg7: memref<1x32xf32, #tpu.memory_space<vmem>>, %arg8: memref<32x32xf32, #tpu.memory_space<vmem>>, %arg9: memref<1x32xf32, #tpu.memory_space<vmem>>, %arg10: memref<16x32xf32, #tpu.memory_space<vmem>>) attributes {dimension_semantics = [#tpu.dimension_semantics<parallel>], iteration_bounds = array<i64: 1>, scalar_prefetch = 0 : i64, scratch_operands = 0 : i64, tpu.core_type = #tpu.core_type<tc>, window_params = [{transform_indices = @transform_0, window_bounds = array<i64: 16, 16>}, {transform_indices = @transform_1, window_bounds = array<i64: 16, 32>}, {transform_indices = @transform_2, window_bounds = array<i64: 16, 1>}, {pipeline_mode = #tpu.pipeline_mode<synchronous>, transform_indices = @transform_3, window_bounds = array<i64: 16, 32>}, {pipeline_mode = #tpu.pipeline_mode<synchronous>, transform_indices = @transform_4, window_bounds = array<i64: 1, 32>}, {pipeline_mode = #tpu.pipeline_mode<synchronous>, transform_indices = @transform_5, window_bounds = array<i64: 1, 32>}, {pipeline_mode = #tpu.pipeline_mode<synchronous>, transform_indices = @transform_6, window_bounds = array<i64: 1, 32>}, {pipeline_mode = #tpu.pipeline_mode<synchronous>, transform_indices = @transform_7, window_bounds = array<i64: 32, 32>}, {pipeline_mode = #tpu.pipeline_mode<synchronous>, transform_indices = @transform_8, window_bounds = array<i64: 1, 32>}, {transform_indices = @transform_9, window_bounds = array<i64: 16, 32>}]} {
    %c0 = arith.constant 0 : index
    %c0_0 = arith.constant 0 : index
    %0 = vector.load %arg1[%c0, %c0_0] : memref<16x16xf32, #tpu.memory_space<vmem>>, vector<16x16xf32>
    %c0_1 = arith.constant 0 : index
    %c0_2 = arith.constant 0 : index
    %1 = vector.load %arg4[%c0_1, %c0_2] : memref<16x32xf32, #tpu.memory_space<vmem>>, vector<16x32xf32>
    %c0_3 = arith.constant 0 : index
    %c0_4 = arith.constant 0 : index
    %2 = vector.load %arg5[%c0_3, %c0_4] : memref<1x32xf32, #tpu.memory_space<vmem>>, vector<1x32xf32>
    %cst = arith.constant dense<0.000000e+00> : vector<16x32xf32>
    %3 = tpu.matmul %0, %1, %cst {dimension_numbers = #tpu.dot_dimension_numbers<[1], [0], [0], [1], [0, 0, 1, 1], [], []>} : vector<16x16xf32>, vector<16x32xf32>, vector<16x32xf32> -> vector<16x32xf32>
    %4 = vector.broadcast %2 : vector<1x32xf32> to vector<16x32xf32>
    %5 = arith.addf %3, %4 : vector<16x32xf32>
    %c0_5 = arith.constant 0 : index
    %c0_6 = arith.constant 0 : index
    %6 = vector.load %arg6[%c0_5, %c0_6] : memref<1x32xf32, #tpu.memory_space<vmem>>, vector<1x32xf32>
    %c0_7 = arith.constant 0 : index
    %c0_8 = arith.constant 0 : index
    %7 = vector.load %arg7[%c0_7, %c0_8] : memref<1x32xf32, #tpu.memory_space<vmem>>, vector<1x32xf32>
    %cst_9 = arith.constant dense<0.000000e+00> : vector<16xf32>
    %8 = vector.multi_reduction <add>, %5, %cst_9 [1] : vector<16x32xf32> to vector<16xf32>
    %9 = vector.shape_cast %8 : vector<16xf32> to vector<16x1xf32>
    %cst_10 = arith.constant 3.200000e+01 : f32
    %10 = vector.broadcast %cst_10 : f32 to vector<16x1xf32>
    %11 = arith.divf %9, %10 : vector<16x1xf32>
    %12 = arith.mulf %5, %5 : vector<16x32xf32>
    %cst_11 = arith.constant dense<0.000000e+00> : vector<16xf32>
    %13 = vector.multi_reduction <add>, %12, %cst_11 [1] : vector<16x32xf32> to vector<16xf32>
    %14 = vector.shape_cast %13 : vector<16xf32> to vector<16x1xf32>
    %cst_12 = arith.constant 3.200000e+01 : f32
    %15 = vector.broadcast %cst_12 : f32 to vector<16x1xf32>
    %16 = arith.divf %14, %15 : vector<16x1xf32>
    %17 = arith.mulf %11, %11 : vector<16x1xf32>
    %18 = arith.subf %16, %17 : vector<16x1xf32>
    %cst_13 = arith.constant 0.000000e+00 : f32
    %19 = vector.broadcast %cst_13 : f32 to vector<16x1xf32>
    %20 = arith.maximumf %18, %19 : vector<16x1xf32>
    %21 = vector.broadcast %11 : vector<16x1xf32> to vector<16x32xf32>
    %22 = arith.subf %5, %21 : vector<16x32xf32>
    %cst_14 = arith.constant 9.99999974E-6 : f32
    %23 = vector.broadcast %cst_14 : f32 to vector<16x1xf32>
    %24 = arith.addf %20, %23 : vector<16x1xf32>
    %25 = math.rsqrt %24 : vector<16x1xf32>
    %26 = vector.broadcast %25 : vector<16x1xf32> to vector<16x32xf32>
    %27 = arith.mulf %22, %26 : vector<16x32xf32>
    %28 = vector.broadcast %6 : vector<1x32xf32> to vector<16x32xf32>
    %29 = arith.mulf %27, %28 : vector<16x32xf32>
    %30 = vector.broadcast %7 : vector<1x32xf32> to vector<16x32xf32>
    %31 = arith.addf %29, %30 : vector<16x32xf32>
    %cst_15 = arith.constant 0.000000e+00 : f32
    %32 = vector.broadcast %cst_15 : f32 to vector<16x32xf32>
    %33 = arith.maximumf %31, %32 : vector<16x32xf32>
    %c0_16 = arith.constant 0 : index
    %c0_17 = arith.constant 0 : index
    %34 = vector.load %arg8[%c0_16, %c0_17] : memref<32x32xf32, #tpu.memory_space<vmem>>, vector<32x32xf32>
    %c0_18 = arith.constant 0 : index
    %c0_19 = arith.constant 0 : index
    %35 = vector.load %arg9[%c0_18, %c0_19] : memref<1x32xf32, #tpu.memory_space<vmem>>, vector<1x32xf32>
    %cst_20 = arith.constant dense<0.000000e+00> : vector<16x32xf32>
    %36 = tpu.matmul %33, %34, %cst_20 {dimension_numbers = #tpu.dot_dimension_numbers<[1], [0], [0], [1], [0, 0, 1, 1], [], []>} : vector<16x32xf32>, vector<32x32xf32>, vector<16x32xf32> -> vector<16x32xf32>
    %37 = vector.broadcast %35 : vector<1x32xf32> to vector<16x32xf32>
    %38 = arith.addf %36, %37 : vector<16x32xf32>
    %c0_21 = arith.constant 0 : index
    %c0_22 = arith.constant 0 : index
    %39 = vector.load %arg2[%c0_21, %c0_22] : memref<16x32xf32, #tpu.memory_space<vmem>>, vector<16x32xf32>
    %40 = arith.addf %38, %39 : vector<16x32xf32>
    %c0_23 = arith.constant 0 : index
    %c0_24 = arith.constant 0 : index
    %41 = vector.load %arg3[%c0_23, %c0_24] : memref<16x1xf32, #tpu.memory_space<vmem>>, vector<16x1xf32>
    %cst_25 = arith.constant 0.000000e+00 : f32
    %42 = vector.broadcast %cst_25 : f32 to vector<16x1xf32>
    %43 = arith.cmpf ogt, %41, %42 : vector<16x1xf32>
    %cst_26 = arith.constant 0.000000e+00 : f32
    %44 = vector.shape_cast %43 : vector<16x1xi1> to vector<16x1xi1>
    %45 = vector.broadcast %44 : vector<16x1xi1> to vector<16x32xi1>
    %46 = vector.broadcast %cst_26 : f32 to vector<16x32xf32>
    %47 = arith.select %45, %40, %46 : vector<16x32xi1>, vector<16x32xf32>
    %c0_27 = arith.constant 0 : index
    %c0_28 = arith.constant 0 : index
    %48 = vector.load %arg10[%c0_27, %c0_28] : memref<16x32xf32, #tpu.memory_space<vmem>>, vector<16x32xf32>
    tpu.vector_store %arg10[%c0_27, %c0_28], %47 {strides = array<i32>} : memref<16x32xf32, #tpu.memory_space<vmem>>, vector<16x32xf32>,
    return
  }
  func.func @transform_0(%arg0: i32) -> (i32, i32) {
    %c0_i32 = arith.constant 0 : i32
    %c0_i32_0 = arith.constant 0 : i32
    return %arg0, %c0_i32 : i32, i32
  }
  func.func @transform_1(%arg0: i32) -> (i32, i32) {
    %c0_i32 = arith.constant 0 : i32
    %c0_i32_0 = arith.constant 0 : i32
    return %arg0, %c0_i32 : i32, i32
  }
  func.func @transform_2(%arg0: i32) -> (i32, i32) {
    %c0_i32 = arith.constant 0 : i32
    %c0_i32_0 = arith.constant 0 : i32
    return %arg0, %c0_i32 : i32, i32
  }
  func.func @transform_3(%arg0: i32) -> (i32, i32) {
    %c0_i32 = arith.constant 0 : i32
    %c0_i32_0 = arith.constant 0 : i32
    %c0_i32_1 = arith.constant 0 : i32
    return %c0_i32, %c0_i32_0 : i32, i32
  }
  func.func @transform_4(%arg0: i32) -> (i32, i32) {
    %c0_i32 = arith.constant 0 : i32
    %c0_i32_0 = arith.constant 0 : i32
    %c0_i32_1 = arith.constant 0 : i32
    return %c0_i32, %c0_i32_0 : i32, i32
  }
  func.func @transform_5(%arg0: i32) -> (i32, i32) {
    %c0_i32 = arith.constant 0 : i32
    %c0_i32_0 = arith.constant 0 : i32
    %c0_i32_1 = arith.constant 0 : i32
    return %c0_i32, %c0_i32_0 : i32, i32
  }
  func.func @transform_6(%arg0: i32) -> (i32, i32) {
    %c0_i32 = arith.constant 0 : i32
    %c0_i32_0 = arith.constant 0 : i32
    %c0_i32_1 = arith.constant 0 : i32
    return %c0_i32, %c0_i32_0 : i32, i32
  }
  func.func @transform_7(%arg0: i32) -> (i32, i32) {
    %c0_i32 = arith.constant 0 : i32
    %c0_i32_0 = arith.constant 0 : i32
    %c0_i32_1 = arith.constant 0 : i32
    return %c0_i32, %c0_i32_0 : i32, i32
  }
  func.func @transform_8(%arg0: i32) -> (i32, i32) {
    %c0_i32 = arith.constant 0 : i32
    %c0_i32_0 = arith.constant 0 : i32
    %c0_i32_1 = arith.constant 0 : i32
    return %c0_i32, %c0_i32_0 : i32, i32
  }
  func.func @transform_9(%arg0: i32) -> (i32, i32) {
    %c0_i32 = arith.constant 0 : i32
    %c0_i32_0 = arith.constant 0 : i32
    return %arg0, %c0_i32 : i32, i32
  }
}

</mosaic_0001>

<bundles_post_ra>
// kernel: input_pe_encoder.1
= control target key start
LH: loop header
LB: loop body
LE: loop exit
PB: predicated region body
PF: predicated region fallthrough
CT: control target
= control target key end

     0   :  { %14 = vsyncpa [#allocation3], 0  ;;  %s527_s0 = inlined_call_operand.vmem [shape: f32[16,16], index: 0, kind: input, shape index: {}]   ;;  %s528_s1 = inlined_call_operand.hbm [shape: f32[16,32], index: 1, kind: input, shape index: {}]   ;;  %s529_s2 = inlined_call_operand.vmem [shape: f32[16,1], index: 2, kind: input, shape index: {}]   ;;  %s530_s3 = inlined_call_operand.hbm [shape: f32[16,32], index: 3, kind: input, shape index: {}]   ;;  %s531_s4 = inlined_call_operand.vmem [shape: f32[1,32], index: 4, kind: input, shape index: {}]   ;;  %s532_s5 = inlined_call_operand.vmem [shape: f32[1,32], index: 5, kind: input, shape index: {}]   ;;  %s533_s6 = inlined_call_operand.vmem [shape: f32[1,32], index: 6, kind: input, shape index: {}]   ;;  %s534_s7 = inlined_call_operand.hbm [shape: f32[32,32], index: 7, kind: input, shape index: {}]   ;;  %s535_s8 = inlined_call_operand.vmem [shape: f32[1,32], index: 8, kind: input, shape index: {}]   ;;  %s536_s9 = inlined_call_operand.hbm [shape: f32[16,32], index: 9, kind: output, shape index: {}]  }
   0x1   :  { %15 = vsyncpa [#allocation6], 0 }
   0x2   :  { %16 = vsyncpa [#allocation4], 0  ;;  %s38_s11 = sshll.u32 %s530_s3, 4  ;;  %s401_s12 = smov [#allocation5]   ;;  %s39_s11 = int_to_ptr.hbm [resolvable:$true] %s38_s11 }
   0x3   :  { %s40_s13 = sshll.u32 %s401_s12, 4  ;;  %s23_s16 = sshll.u32 %s528_s1, 4  ;;  %s41_s13 = int_to_ptr.vmem [resolvable:$true] %s40_s13  ;;  %s24_s16 = int_to_ptr.hbm [resolvable:$true] %s23_s16 }
   0x4   :  { %s402_s17 = smov 128   ;;  %s403_s18 = smov 8  }
   0x5   :  { %46 = dma.hbm_to_vmem [thread:$0]  %s39_s11, 256, %s41_s13, [#allocation6], %s402_s17, %s402_s17, %s403_s18  }
   0x6   :  { %s404_s19 = smov [#allocation2]   ;;  %s57_s3 = sshll.u32 %s534_s7, 4  ;;  %s58_s3 = int_to_ptr.hbm [resolvable:$true] %s57_s3 }
   0x7   :  { %s25_s20 = sshll.u32 %s404_s19, 4  ;;  %s405_s1 = smov [#allocation7]   ;;  %s26_s20 = int_to_ptr.vmem [resolvable:$true] %s25_s20 }
   0x8   :  { %31 = dma.hbm_to_vmem [thread:$0]  %s24_s16, 256, %s26_s20, [#allocation3], %s402_s17, %s402_s17, %s403_s18  }
   0x9   :  { %s59_s23 = sshll.u32 %s405_s1, 4  ;;  %s60_s23 = int_to_ptr.vmem [resolvable:$true] %s59_s23 }
   0xa   :  { %65 = dma.hbm_to_vmem [thread:$0]  %s58_s3, 512, %s60_s23, [#allocation6], %s402_s17, %s402_s17, %s403_s18  }
   0xb   :  { %395 = dma.done.wait [#allocation3], 256  }
   0xc   :  { %396 = vsyncadd [#allocation3], 4294967040 }
   0xd   :  { %397 = dma.done.wait [#allocation6], 768  }
   0xe   :  { %398 = vsyncadd [#allocation6], 4294966528  ;;  %v83_v0 = vld [vmem:[#allocation5 + $0x8] sm:$0xff]  ;;  %v82_v1 = vld [vmem:[#allocation5] sm:$0xff]  ;;  %vm88_vm0 = vcmask 130048   ;;  %vm120_vm1 = vcmask 261120  }
   0xf   :  { %109 = vmatpush.msra.mxu0 %v83_v0  ;;  %273 = vmatpush.msra.mxu3 %v83_v0  ;;  %v80_v2 = vld [vmem:[%s527_s0] sm:$0xff]  ;;  %v81_v3 = vld [vmem:[%s527_s0 + $0x8] sm:$0xff]  ;;  %v406_v15 = vmov 32.0   ;;  %v193_v23 = vld [vmem:[#allocation7 + $0x18] sm:$0xff]  ;;  %v407_v41 = vmov 0   ;;  %s408_s13 = smov [#allocation8]  }
  0x10   :  { %v289_v4 = vld [vmem:[%s531_s4] ss:$0 sm:$0xff]  ;;  %293 = vrcp.f32 %v406_v15  ;;  %216 = vmatpush.msra.mxu1 %v193_v23  ;;  %275 = vmatpush.msra.mxu2 %v193_v23  ;;  %v192_v25 = vld [vmem:[#allocation7 + $0x10] sm:$0xff]  ;;  %v191_v27 = vld [vmem:[#allocation7 + $0x8] sm:$0xff]  ;;  %s253_s14 = sshll.u32 %s408_s13, 4  ;;  %s255_s19 = sshll.u32 %s536_s9, 4  ;;  %s254_s14 = int_to_ptr.vmem [resolvable:$true] %s253_s14  ;;  %s256_s19 = int_to_ptr.hbm [resolvable:$true] %s255_s19 }
  0x11   :  { %110 = vmatpush.msra.mxu0 %v82_v1  ;;  %274 = vmatpush.msra.mxu3 %v82_v1  ;;  %v190_v29 = vld [vmem:[#allocation7] sm:$0xff]  ;;  %v232_v44 = vld [vmem:[%s529_s2 + $0x8] sm:$0xff] }
  0x12   :  { %269 = vmatmul.msk.f32.vlgmr.msra.gmra.mxu0 %vm88_vm0, %v80_v2  ;;  %270 = vmatmul.msk.f32.vlgmr.msra.gmra.mxu3 %vm88_vm0, %v81_v3  ;;  %v231_v40 = vld [vmem:[%s529_s2] sm:$0xff]  ;;  %vm234_vm4 = vcmp.gt.f32.partialorder %v232_v44, 0.0 }
  0x13   :  { %217 = vmatpush.msra.mxu1 %v192_v25  ;;  %276 = vmatpush.msra.mxu2 %v192_v25  ;;  %vm233_vm3 = vcmp.gt.f32.partialorder %v231_v40, 0.0  ;;  %v236_v48 = vsel %vm234_vm4, 1, %v407_v41  ;;  %v290_v57 = vld [vmem:[%s532_s5] ss:$0 sm:$0xff] }
  0x14   :  { %287 = vset.pattern.permute.xlu2 %v407_v41  ;;  %288 = vset.pattern.permute.xlu0 %v407_v41  ;;  %v235_v43 = vsel %vm233_vm3, 1, %v407_v41  ;;  %v291_v61 = vld [vmem:[%s533_s6] ss:$0 sm:$0xff] }
  0x15   :  { %218 = vmatpush.msra.mxu1 %v191_v27  ;;  %277 = vmatpush.msra.mxu2 %v191_v27 }
  0x16   :  { %v294_v16 = vpop.eup %293  ;;  %238 = vperm.xlu2 %287, %v235_v43  }
  0x17   :  { %v128_v17 = vmul.f32 32.0, %v294_v16  ;;  %vm132_vm2 = vweird.f32 %v294_v16  ;;  %219 = vmatpush.msra.mxu1 %v190_v29  ;;  %278 = vmatpush.msra.mxu2 %v190_v29 }
  0x19   :  { %v129_v18 = vsub.f32 1.0, %v128_v17  ;;  %v228_v17 = vld [vmem:[#allocation2 + $0x8] sm:$0xff] }
  0x1b   :  { %v130_v19 = vmul.f32 %v294_v16, %v129_v18 }
  0x1d   :  { %v131_v20 = vadd.f32 %v294_v16, %v130_v19 }
  0x1e   :  { %241 = vperm.xlu2 %287, %v236_v48  }
  0x1f   :  { %v133_v22 = vsel %vm132_vm2, %v294_v16, %v131_v20 }
  0x8f   :  { %v112_v5 = vpop.f32.mrf.mxu0 }
  0x90   :  { %v486_v6 = vadd.f32 %v289_v4, %v112_v5 }
  0x92   :  { %v121_v7 = vsel %vm120_vm1, %v486_v6, 0.0  ;;  %v136_v8 = vmul.f32 %v486_v6, %v486_v6 }
  0x93   :  { %122 = vadd.xlane.f32.xlu1 %v121_v7 }
  0x94   :  { %v138_v12 = vsel %vm120_vm1, %v136_v8, 0.0 }
  0x95   :  { %v115_v9 = vpop.f32.mrf.mxu3 }
  0x96   :  { %v492_v10 = vadd.f32 %v289_v4, %v115_v9  ;;  %v292_v9 = vld [vmem:[%s535_s8] ss:$0 sm:$0xff] }
  0x98   :  { %v124_v11 = vsel %vm120_vm1, %v492_v10, 0.0  ;;  %v137_v13 = vmul.f32 %v492_v10, %v492_v10 }
  0x99   :  { %125 = vadd.xlane.f32.xlu0 %v124_v11 }
  0x9a   :  { %v141_v14 = vsel %vm120_vm1, %v137_v13, 0.0  ;;  %v239_v13 = vpop.permute.xlu2 %238 }
  0x9b   :  { %139 = vadd.xlane.f32.xlu1 %v138_v12  ;;  %v227_v12 = vld [vmem:[#allocation2] sm:$0xff]  ;;  %vm243_vm11 = vcmp.eq.s32.totalorder %v239_v13, 1 }
  0xa1   :  { %142 = vadd.xlane.f32.xlu0 %v141_v14 }
  0xa2   :  { %v242_v18 = vpop.permute.xlu2 %241 }
  0xa3   :  { %vm244_vm12 = vcmp.eq.s32.totalorder %v242_v18, 1 }
 0x106   :  { %v123_v21 = vpop.xlane.xlu1 %122 }
 0x107   :  { %v134_v24 = vmul.f32 %v133_v22, %v123_v21 }
 0x109   :  { %v146_v28 = vmul.f32 %v134_v24, %v134_v24  ;;  %v152_v56 = vsub.f32 %v486_v6, %v134_v24 }
 0x10c   :  { %v126_v26 = vpop.xlane.xlu0 %125 }
 0x10d   :  { %v135_v32 = vmul.f32 %v133_v22, %v126_v26 }
 0x10e   :  { %v140_v30 = vpop.xlane.xlu1 %139 }
 0x10f   :  { %v144_v31 = vmul.f32 %v140_v30, %v133_v22  ;;  %v147_v36 = vmul.f32 %v135_v32, %v135_v32  ;;  %v153_v1 = vsub.f32 %v492_v10, %v135_v32 }
 0x111   :  { %v148_v33 = vsub.f32 %v144_v31, %v146_v28 }
 0x113   :  { %v150_v34 = vmax.f32 %v148_v33, 0.0 }
 0x114   :  { %v143_v35 = vpop.xlane.xlu0 %142 }
 0x115   :  { %v154_v37 = vadd.f32 1e-05, %v150_v34  ;;  %v145_v38 = vmul.f32 %v143_v35, %v133_v22 }
 0x117   :  { %295 = vrsqrt.f32 %v154_v37  ;;  %v149_v39 = vsub.f32 %v145_v38, %v147_v36  ;;  %vm162_vm5 = vweird.f32 %v154_v37 }
 0x119   :  { %v151_v42 = vmax.f32 %v149_v39, 0.0 }
 0x11b   :  { %v155_v45 = vadd.f32 1e-05, %v151_v42 }
 0x11d   :  { %v296_v46 = vpop.eup %295  ;;  %297 = vrsqrt.f32 %v155_v45  ;;  %vm172_vm9 = vweird.f32 %v155_v45 }
 0x11e   :  { %v157_v47 = vmul.f32 %v296_v46, %v154_v37  ;;  %vm163_vm6 = vweird.f32 %v296_v46 }
 0x11f   :  { %vm164_vm7 = vmor %vm162_vm5, %vm163_vm6 }
 0x120   :  { %v158_v49 = vmul.f32 %v296_v46, %v157_v47 }
 0x122   :  { %v159_v50 = vmul.f32 0.5, %v158_v49 }
 0x123   :  { %v298_v51 = vpop.eup %297 }
 0x124   :  { %v160_v52 = vsub.f32 1.5, %v159_v50  ;;  %v167_v53 = vmul.f32 %v298_v51, %v155_v45  ;;  %vm173_vm8 = vweird.f32 %v298_v51 }
 0x125   :  { %vm174_vm10 = vmor %vm172_vm9, %vm173_vm8 }
 0x126   :  { %v161_v54 = vmul.f32 %v296_v46, %v160_v52  ;;  %v168_v55 = vmul.f32 %v298_v51, %v167_v53 }
 0x128   :  { %v169_v58 = vmul.f32 0.5, %v168_v55  ;;  %v165_v59 = vsel %vm164_vm7, %v296_v46, %v161_v54 }
 0x129   :  { %v176_v60 = vmul.f32 %v165_v59, %v152_v56 }
 0x12a   :  { %v170_v62 = vsub.f32 1.5, %v169_v58 }
 0x12b   :  { %v181_v63 = vmul.f32 %v290_v57, %v176_v60 }
 0x12c   :  { %v171_v0 = vmul.f32 %v298_v51, %v170_v62 }
 0x12d   :  { %v186_v2 = vadd.f32 %v291_v61, %v181_v63 }
 0x12e   :  { %v175_v3 = vsel %vm174_vm10, %v298_v51, %v171_v0 }
 0x12f   :  { %v188_v4 = vmax.f32 %v186_v2, 0.0  ;;  %v177_v5 = vmul.f32 %v175_v3, %v153_v1 }
 0x131   :  { %271 = vmatmul.msk.f32.vlgmr.msra.gmra.mxu1 %vm120_vm1, %v188_v4  ;;  %v182_v6 = vmul.f32 %v290_v57, %v177_v5 }
 0x133   :  { %v187_v7 = vadd.f32 %v291_v61, %v182_v6 }
 0x135   :  { %v189_v8 = vmax.f32 %v187_v7, 0.0 }
 0x137   :  { %272 = vmatmul.msk.f32.vlgmr.msra.gmra.mxu2 %vm120_vm1, %v189_v8 }
 0x1ae   :  { %v221_v11 = vpop.f32.mrf.mxu1 }
 0x1af   :  { %v222_v10 = vadd.f32 %v292_v9, %v221_v11 }
 0x1b1   :  { %v229_v14 = vadd.f32 %v227_v12, %v222_v10 }
 0x1b3   :  { %v245_v15 = vsel %vm243_vm11, %v229_v14, 0.0 }
 0x1b4   :  { %247 = vst.msk [vmem:[#allocation8] sm:$0xff] %vm120_vm1, %v245_v15 }
 0x1ba   :  { %v224_v16 = vpop.f32.mrf.mxu2 }
 0x1bb   :  { %v225_v19 = vadd.f32 %v292_v9, %v224_v16 }
 0x1bd   :  { %v230_v20 = vadd.f32 %v228_v17, %v225_v19 }
 0x1bf   :  { %v246_v21 = vsel %vm244_vm12, %v230_v20, 0.0 }
 0x1c0   :  { %248 = vst.msk [vmem:[#allocation8 + $0x8] sm:$0xff] %vm120_vm1, %v246_v21 }
 0x1c1   :  { %261 = dma.vmem_to_hbm [thread:$0]  %s254_s14, 256, %s256_s19, [#allocation4], %s402_s17, %s402_s17, %s403_s18  }
 0x1c2   :  { %399 = dma.done.wait [#allocation4], 256  }
 0x1c3   :  { %400 = vsyncadd [#allocation4], 4294967040 }
 0x1c4   :  { %266 = vsyncpa [#allocation3], 1 }
 0x1c5   :  { %267 = vsyncpa [#allocation6], 1 }
 0x1c6   :  { %268 = vsyncpa [#allocation4], 1 }

</bundles_post_ra>
